<compile_context>
chip_gen: v7x
topology: tpu7x:2x2x1
jax: 0.10.0
libtpu: 0.0.40
codegen_flags: <defaults>
</compile_context>

<pallas_src>
import jax
import jax.numpy as jnp
from jax.experimental import pallas as pl
from jax.experimental.pallas import tpu as pltpu

LANE = 128            # lane width (last-dim tiling)
ROW_ALIGN = 16        # sublane alignment for bf16 activation tiles
MAX_TILE_N = 512      # rows per grid step (upper bound)
MXU_ROW_FLOOR = 256   # don't shrink M tiles below this while N allows


def _round_up(x, m):
    return (x + m - 1) // m * m


def _pad2(a, rows, cols):
    return jnp.pad(a, ((0, rows - a.shape[0]), (0, cols - a.shape[1])))


def _vmem_capacity_bytes():
    """Per-generation VMEM capacity (128 MiB v5e/v6e, 64 MiB per-TC v7x)."""
    try:
        info = pltpu.get_tpu_info()
        cap = getattr(info, "vmem_capacity_bytes", None)
        if cap:
            return int(cap)
    except Exception:
        pass
    return 64 * 1024 * 1024  # conservative fallback (v7x per-TC)


def _param_spec(shape):
    """Constant-index, single-buffered BlockSpec for resident parameters."""
    try:
        return pl.BlockSpec(shape, lambda i: (0, 0),
                            pipeline_mode=pl.Buffered(1))
    except TypeError:  # older jax without pipeline_mode: fall back to default
        return pl.BlockSpec(shape, lambda i: (0, 0))


# ----------------------------- stage definitions -----------------------------
class Linear:
    """y = x @ W + b  (W: (D_in, D_out), b: (1, D_out))."""

    n_params = 2
    zero_preserving = True   # zero-padded lanes stay zero (W, b pads are zero)

    def __init__(self, w, b):
        self.w = w
        self.b = b
        self._pad_cache = {}

    def out_dim(self, d_in):
        assert self.w.shape[0] == d_in, "feature-dim mismatch in composition"
        return self.w.shape[1]

    def padded_params(self, d_in_pad, d_out_pad):
        # Pad + cast once, memoized: no per-call pad/convert HBM traffic.
        key = (d_in_pad, d_out_pad)
        if key not in self._pad_cache:
            w = _pad2(self.w, d_in_pad, d_out_pad).astype(jnp.bfloat16)
            b = _pad2(self.b, 1, d_out_pad).astype(jnp.float32)
            self._pad_cache[key] = (jax.device_put(w), jax.device_put(b))
        return self._pad_cache[key]

    # In-kernel: bf16 into the MXU, f32 accumulation + f32 bias add.
    # (Intentional precision trade-off vs the f32 PyTorch reference.)
    def apply(self, x, w, b):
        return jnp.dot(x.astype(jnp.bfloat16), w,
                       preferred_element_type=jnp.float32) + b

    # Pure-JAX f32 reference (mirrors the PyTorch forward).
    def ref_apply(self, x):
        return jnp.dot(x, self.w.astype(jnp.float32),
                       preferred_element_type=jnp.float32) + self.b.astype(jnp.float32)


class ReLU:
    n_params = 0
    zero_preserving = True

    def out_dim(self, d):
        return d

    def apply(self, x):
        return jnp.maximum(x, 0.0)          # VPU

    def ref_apply(self, x):
        return jnp.maximum(x.astype(jnp.float32), 0.0)


class Tanh:
    n_params = 0
    zero_preserving = True

    def out_dim(self, d):
        return d

    def apply(self, x):
        return jnp.tanh(x)                  # EUP

    def ref_apply(self, x):
        return jnp.tanh(x.astype(jnp.float32))


# --------------------------------- Compose -----------------------------------
class Compose:
    """JAX/Pallas analogue of the PyTorch Compose module (fused forward)."""

    def __init__(self, *fn_list):
        self.fn_list = fn_list
        # Lane-padding exactness requires every stage to map 0 -> 0 on padded
        # lanes; guard against future non-zero-preserving stages (softmax, LN).
        assert all(getattr(fn, "zero_preserving", False) for fn in fn_list), \
            "all stages must be zero-preserving for lane padding to be exact"
        self._plan_cache = {}

    def _plan(self, D0):
        """Per-input-width plan: dims, padded dims, padded params (memoized)."""
        if D0 in self._plan_cache:
            return self._plan_cache[D0]
        dims = [D0]
        for fn in self.fn_list:
            dims.append(fn.out_dim(dims[-1]))
        pdims = [_round_up(d, LANE) for d in dims]
        flat_params, nparams = [], []
        for idx, fn in enumerate(self.fn_list):
            nparams.append(fn.n_params)
            if fn.n_params:
                flat_params.extend(fn.padded_params(pdims[idx], pdims[idx + 1]))
        self._plan_cache[D0] = (dims, pdims, tuple(flat_params), tuple(nparams))
        return self._plan_cache[D0]

    def __call__(self, x):
        assert x.ndim == 2, "expects flattened (N, D) activations"
        N, D0 = x.shape
        out_dtype = x.dtype
        out_itemsize = jnp.dtype(out_dtype).itemsize

        dims, pdims, flat_params, nparams = self._plan(D0)
        D_out, D_out_pad = dims[-1], pdims[-1]
        D0_pad = pdims[0]

        # ---------------- per-generation VMEM budget ----------------
        vmem_cap = _vmem_capacity_bytes()
        vmem_budget = int(vmem_cap * 0.70)
        vmem_limit = int(vmem_cap * 0.85)

        # ---------------- row-tile selection ----------------
        n_rows = _round_up(N, ROW_ALIGN)
        param_bytes = sum(int(a.size) * a.dtype.itemsize for a in flat_params)

        def vmem_bytes(t):
            act = 2 * t * D0_pad * 2                   # bf16 input, dbl-buffered
            out = 2 * t * D_out_pad * out_itemsize     # output, dbl-buffered
            inter = 2 * t * max(pdims) * 4             # f32 live intermediates
            return param_bytes + act + out + inter     # params single-buffered

        tile_n = min(MAX_TILE_N, n_rows)
        # Guarantee >= 2 grid steps when N allows (v7x: shard across both TCs).
        if n_rows >= 2 * ROW_ALIGN:
            tile_n = min(tile_n, _round_up(pl.cdiv(n_rows, 2), ROW_ALIGN))
        # MXU-friendly floor: prefer relieving VMEM elsewhere over tiny M tiles.
        floor = min(_round_up(min(MXU_ROW_FLOOR, n_rows), ROW_ALIGN), tile_n)
        while tile_n > floor and vmem_bytes(tile_n) > vmem_budget:
            tile_n = max(floor, _round_up(tile_n // 2, ROW_ALIGN))
        # Last resort (huge feature dims): allow shrinking below the MXU floor.
        while tile_n > ROW_ALIGN and vmem_bytes(tile_n) > vmem_budget:
            tile_n = max(ROW_ALIGN, _round_up(tile_n // 2, ROW_ALIGN))

        N_pad = _round_up(N, tile_n)
        grid = (N_pad // tile_n,)

        # Activation prologue: pad in native dtype, single cast to bf16
        # (no f32 round-trip; padded rows/lanes are zero and sliced off after).
        x_pad = _pad2(x, N_pad, D0_pad).astype(jnp.bfloat16)

        # ---- specs: activation tile marches over rows, params stay resident ----
        in_specs = [pl.BlockSpec((tile_n, D0_pad), lambda i: (i, 0))]
        for p in flat_params:
            in_specs.append(_param_spec(p.shape))
        out_spec = pl.BlockSpec((tile_n, D_out_pad), lambda i: (i, 0))

        # ---- cost estimate (advisory) ----
        flops = 0
        transcendentals = 0
        for idx, fn in enumerate(self.fn_list):
            if isinstance(fn, Linear):
                flops += 2 * N_pad * pdims[idx] * pdims[idx + 1]
            if isinstance(fn, Tanh):
                transcendentals += N_pad * pdims[idx + 1]
        bytes_accessed = (x_pad.size * x_pad.dtype.itemsize
                          + param_bytes
                          + N_pad * D_out_pad * out_itemsize)

        fn_list = self.fn_list

        # ---- fused kernel: sequential composition, all in VMEM ----
        def kernel(x_ref, *rest):
            out_ref = rest[-1]
            param_refs = rest[:-1]
            val = x_ref[...]                 # bf16 tile; no dead f32 upcast
            off = 0
            for fn, n in zip(fn_list, nparams):
                prefs = param_refs[off:off + n]
                off += n
                val = fn.apply(val, *(r[...] for r in prefs))
            out_ref[...] = val.astype(out_ref.dtype)

        out_pad = pl.pallas_call(
            kernel,
            grid=grid,
            in_specs=in_specs,
            out_specs=out_spec,
            out_shape=jax.ShapeDtypeStruct((N_pad, D_out_pad), out_dtype),
            compiler_params=pltpu.CompilerParams(
                dimension_semantics=("parallel",),
                vmem_limit_bytes=vmem_limit),
            cost_estimate=pl.CostEstimate(
                flops=int(flops),
                transcendentals=int(transcendentals),
                bytes_accessed=int(bytes_accessed)),
        )(x_pad, *flat_params)

        return out_pad[:N, :D_out]

    # Pure-JAX f32 reference (mirrors PyTorch forward exactly).
    def reference(self, x):
        val = x.astype(jnp.float32)
        for fn in self.fn_list:
            val = fn.ref_apply(val)
        return val.astype(x.dtype)


# ----------------------------------- main -------------------------------------
if __name__ == "__main__":
    key = jax.random.PRNGKey(0)
    k_x, k_w1, k_b1, k_w2, k_b2 = jax.random.split(key, 5)

    batch, seq, hidden, mid = 2, 8, 32, 64

    # Deterministic synthetic parameters (shapes implied by the composition).
    w1 = jax.random.normal(k_w1, (hidden, mid), jnp.float32) * 0.1
    b1 = jax.random.normal(k_b1, (1, mid), jnp.float32) * 0.1
    w2 = jax.random.normal(k_w2, (mid, hidden), jnp.float32) * 0.1
    b2 = jax.random.normal(k_b2, (1, hidden), jnp.float32) * 0.1

    model = Compose(Linear(w1, b1), ReLU(), Linear(w2, b2), Tanh())

    x = jax.random.normal(k_x, (batch, seq, hidden), jnp.float32)
    x2d = x.reshape(batch * seq, hidden)   # glue reshape outside the kernel

    out = jax.block_until_ready(model(x2d))
    ref = model.reference(x2d)

    assert out.shape == (batch * seq, hidden)
    # bf16 MXU operands + f32 accumulation: intentional precision trade-off vs
    # the f32 PyTorch reference, hence the loosened tolerance.
    assert jnp.allclose(out, ref, atol=2e-2, rtol=2e-2), "mismatch vs reference"

    _ = out.reshape(batch, seq, hidden)    # back to (B, T, D) if desired
    print("KERNEL_OK")
</pallas_src>

<mosaic_0001>
module attributes {stable_mosaic.version = 11 : i64} {
  func.func @kernel(%arg0: i32, %arg1: memref<16x128xbf16, #tpu.memory_space<vmem>>, %arg2: memref<128x128xbf16, #tpu.memory_space<vmem>>, %arg3: memref<1x128xf32, #tpu.memory_space<vmem>>, %arg4: memref<128x128xbf16, #tpu.memory_space<vmem>>, %arg5: memref<1x128xf32, #tpu.memory_space<vmem>>, %arg6: memref<16x128xf32, #tpu.memory_space<vmem>>) attributes {dimension_semantics = [#tpu.dimension_semantics<parallel>], iteration_bounds = array<i64: 1>, scalar_prefetch = 0 : i64, scratch_operands = 0 : i64, tpu.core_type = #tpu.core_type<tc>, window_params = [{transform_indices = @transform_0, window_bounds = array<i64: 16, 128>}, {pipeline_mode = #tpu.pipeline_mode<synchronous>, transform_indices = @transform_1, window_bounds = array<i64: 128, 128>}, {pipeline_mode = #tpu.pipeline_mode<synchronous>, transform_indices = @transform_2, window_bounds = array<i64: 1, 128>}, {pipeline_mode = #tpu.pipeline_mode<synchronous>, transform_indices = @transform_3, window_bounds = array<i64: 128, 128>}, {pipeline_mode = #tpu.pipeline_mode<synchronous>, transform_indices = @transform_4, window_bounds = array<i64: 1, 128>}, {transform_indices = @transform_5, window_bounds = array<i64: 16, 128>}]} {
    %c0 = arith.constant 0 : index
    %c0_0 = arith.constant 0 : index
    %0 = vector.load %arg1[%c0, %c0_0] : memref<16x128xbf16, #tpu.memory_space<vmem>>, vector<16x128xbf16>
    %c0_1 = arith.constant 0 : index
    %c0_2 = arith.constant 0 : index
    %1 = vector.load %arg2[%c0_1, %c0_2] : memref<128x128xbf16, #tpu.memory_space<vmem>>, vector<128x128xbf16>
    %c0_3 = arith.constant 0 : index
    %c0_4 = arith.constant 0 : index
    %2 = vector.load %arg3[%c0_3, %c0_4] : memref<1x128xf32, #tpu.memory_space<vmem>>, vector<1x128xf32>
    %cst = arith.constant dense<0.000000e+00> : vector<16x128xf32>
    %3 = tpu.matmul %0, %1, %cst {dimension_numbers = #tpu.dot_dimension_numbers<[1], [0], [0], [1], [0, 0, 1, 1], [], []>} : vector<16x128xbf16>, vector<128x128xbf16>, vector<16x128xf32> -> vector<16x128xf32>
    %4 = vector.broadcast %2 : vector<1x128xf32> to vector<16x128xf32>
    %5 = arith.addf %3, %4 : vector<16x128xf32>
    %cst_5 = arith.constant 0.000000e+00 : f32
    %6 = vector.broadcast %cst_5 : f32 to vector<16x128xf32>
    %7 = arith.maximumf %5, %6 : vector<16x128xf32>
    %c0_6 = arith.constant 0 : index
    %c0_7 = arith.constant 0 : index
    %8 = vector.load %arg4[%c0_6, %c0_7] : memref<128x128xbf16, #tpu.memory_space<vmem>>, vector<128x128xbf16>
    %c0_8 = arith.constant 0 : index
    %c0_9 = arith.constant 0 : index
    %9 = vector.load %arg5[%c0_8, %c0_9] : memref<1x128xf32, #tpu.memory_space<vmem>>, vector<1x128xf32>
    %10 = arith.truncf %7 : vector<16x128xf32> to vector<16x128xbf16>
    %cst_10 = arith.constant dense<0.000000e+00> : vector<16x128xf32>
    %11 = tpu.matmul %10, %8, %cst_10 {dimension_numbers = #tpu.dot_dimension_numbers<[1], [0], [0], [1], [0, 0, 1, 1], [], []>} : vector<16x128xbf16>, vector<128x128xbf16>, vector<16x128xf32> -> vector<16x128xf32>
    %12 = vector.broadcast %9 : vector<1x128xf32> to vector<16x128xf32>
    %13 = arith.addf %11, %12 : vector<16x128xf32>
    %14 = math.tanh %13 : vector<16x128xf32>
    %c0_11 = arith.constant 0 : index
    %c0_12 = arith.constant 0 : index
    %15 = vector.load %arg6[%c0_11, %c0_12] : memref<16x128xf32, #tpu.memory_space<vmem>>, vector<16x128xf32>
    tpu.vector_store %arg6[%c0_11, %c0_12], %14 {strides = array<i32>} : memref<16x128xf32, #tpu.memory_space<vmem>>, vector<16x128xf32>,
    return
  }
  func.func @transform_0(%arg0: i32) -> (i32, i32) {
    %c0_i32 = arith.constant 0 : i32
    %c0_i32_0 = arith.constant 0 : i32
    return %arg0, %c0_i32 : i32, i32
  }
  func.func @transform_1(%arg0: i32) -> (i32, i32) {
    %c0_i32 = arith.constant 0 : i32
    %c0_i32_0 = arith.constant 0 : i32
    %c0_i32_1 = arith.constant 0 : i32
    return %c0_i32, %c0_i32_0 : i32, i32
  }
  func.func @transform_2(%arg0: i32) -> (i32, i32) {
    %c0_i32 = arith.constant 0 : i32
    %c0_i32_0 = arith.constant 0 : i32
    %c0_i32_1 = arith.constant 0 : i32
    return %c0_i32, %c0_i32_0 : i32, i32
  }
  func.func @transform_3(%arg0: i32) -> (i32, i32) {
    %c0_i32 = arith.constant 0 : i32
    %c0_i32_0 = arith.constant 0 : i32
    %c0_i32_1 = arith.constant 0 : i32
    return %c0_i32, %c0_i32_0 : i32, i32
  }
  func.func @transform_4(%arg0: i32) -> (i32, i32) {
    %c0_i32 = arith.constant 0 : i32
    %c0_i32_0 = arith.constant 0 : i32
    %c0_i32_1 = arith.constant 0 : i32
    return %c0_i32, %c0_i32_0 : i32, i32
  }
  func.func @transform_5(%arg0: i32) -> (i32, i32) {
    %c0_i32 = arith.constant 0 : i32
    %c0_i32_0 = arith.constant 0 : i32
    return %arg0, %c0_i32 : i32, i32
  }
}

</mosaic_0001>

<bundles_post_ra>
// kernel: tpu_custom_call.1
= control target key start
LH: loop header
LB: loop body
LE: loop exit
PB: predicated region body
PF: predicated region fallthrough
CT: control target
= control target key end

     0   :  { %10 = vsyncpa [#allocation3], 0  ;;  %s632_s0 = inlined_call_operand.hbm [shape: bf16[16,128], index: 0, kind: input, shape index: {}]   ;;  %s633_s1 = inlined_call_operand.hbm [shape: bf16[128,128], index: 1, kind: input, shape index: {}]   ;;  %s634_s2 = inlined_call_operand.vmem [shape: f32[1,128], index: 2, kind: input, shape index: {}]   ;;  %s635_s3 = inlined_call_operand.hbm [shape: bf16[128,128], index: 3, kind: input, shape index: {}]   ;;  %s636_s4 = inlined_call_operand.vmem [shape: f32[1,128], index: 4, kind: input, shape index: {}]   ;;  %s637_s5 = inlined_call_operand.hbm [shape: f32[16,128], index: 5, kind: output, shape index: {}]  }
   0x1   :  { %11 = vsyncpa [#allocation6], 0 }
   0x2   :  { %12 = vsyncpa [#allocation4], 0  ;;  %s522_s18 = smov [#allocation5]   ;;  %s523_s20 = smov [#allocation2]  }
   0x3   :  { %s30_s19 = sshll.u32 %s522_s18, 4  ;;  %s18_s21 = sshll.u32 %s523_s20, 4  ;;  %s31_s19 = int_to_ptr.vmem [resolvable:$true] %s30_s19  ;;  %s562_s21 = int_to_ptr.vmem [resolvable:$true] %s18_s21 }
   0x4   :  { %s428_s24 = scalar_lea.hbm %s633_s1, 1024 }
   0x5   :  { %p429_p0 = scmp.ne.s32.totalorder %s633_s1, %s428_s24  ;;  %p432_p1 = scmp.lt.u32.totalorder %s428_s24, %s633_s1 }
   0x7   :  { %p434_p2 = pnand %p432_p1, %p429_p0 }
   0x9   :  { %437 = shalt.err (!%p434_p2)
}
   0xa   :  { %s438_s29 = scalar_lea.vmem %s31_s19, 1024  ;;  %p443_p4 = scmp.lt.s32.totalorder %s31_s19, %s31_s19 }
   0xb   :  { %p439_p3 = scmp.ne.s32.totalorder %s31_s19, %s438_s29  ;;  %p444_p5 = scmp.lt.s32.totalorder %s438_s29, %s438_s29 }
   0xd   :  { %p445_p6 = por %p444_p5, %p443_p4 }
   0xf   :  { %p446_p7 = pnand %p445_p6, %p439_p3 }
  0x11   :  { %449 = shalt.err (!%p446_p7)
}
  0x12   :  { %s524_s30 = smov 64   ;;  %s525_s6 = smov 4  }
  0x13   :  { %36 = dma.hbm_to_vmem [thread:$0]  %s633_s1, 1024, %s31_s19, [#allocation6], %s524_s30, %s524_s30, %s525_s6  }
  0x14   :  { %s450_s11 = scalar_lea.hbm %s632_s0, 128 }
  0x15   :  { %p451_p8 = scmp.ne.s32.totalorder %s632_s0, %s450_s11  ;;  %p454_p9 = scmp.lt.u32.totalorder %s450_s11, %s632_s0 }
  0x17   :  { %p456_p10 = pnand %p454_p9, %p451_p8 }
  0x19   :  { %459 = shalt.err (!%p456_p10)
}
  0x1a   :  { %s460_s16 = scalar_lea.vmem %s562_s21, 128  ;;  %p465_p12 = scmp.lt.s32.totalorder %s562_s21, %s562_s21 }
  0x1b   :  { %p461_p11 = scmp.ne.s32.totalorder %s562_s21, %s460_s16  ;;  %p466_p13 = scmp.lt.s32.totalorder %s460_s16, %s460_s16 }
  0x1d   :  { %p467_p0 = por %p466_p13, %p465_p12 }
  0x1f   :  { %p468_p1 = pnand %p467_p0, %p461_p11 }
  0x21   :  { %471 = shalt.err (!%p468_p1)
}
  0x22   :  { %24 = dma.hbm_to_vmem [thread:$0]  %s632_s0, 128, %s562_s21, [#allocation3], %s524_s30, %s524_s30, %s525_s6  }
  0x23   :  { %s526_s18 = smov [#allocation7]   ;;  %s472_s23 = scalar_lea.hbm %s635_s3, 1024 }
  0x24   :  { %s44_s19 = sshll.u32 %s526_s18, 4  ;;  %p473_p2 = scmp.ne.s32.totalorder %s635_s3, %s472_s23  ;;  %s45_s19 = int_to_ptr.vmem [resolvable:$true] %s44_s19 }
  0x25   :  { %p476_p3 = scmp.lt.u32.totalorder %s472_s23, %s635_s3 }
  0x27   :  { %p478_p4 = pnand %p476_p3, %p473_p2 }
  0x29   :  { %481 = shalt.err (!%p478_p4)
}
  0x2a   :  { %s482_s28 = scalar_lea.vmem %s45_s19, 1024  ;;  %p487_p6 = scmp.lt.s32.totalorder %s45_s19, %s45_s19 }
  0x2b   :  { %p483_p5 = scmp.ne.s32.totalorder %s45_s19, %s482_s28  ;;  %p488_p7 = scmp.lt.s32.totalorder %s482_s28, %s482_s28 }
  0x2d   :  { %p489_p8 = por %p488_p7, %p487_p6 }
  0x2f   :  { %p490_p9 = pnand %p489_p8, %p483_p5 }
  0x31   :  { %493 = shalt.err (!%p490_p9)
}
  0x32   :  { %50 = dma.hbm_to_vmem [thread:$0]  %s635_s3, 1024, %s45_s19, [#allocation6], %s524_s30, %s524_s30, %s525_s6  }
  0x33   :  { %516 = dma.done.wait [#allocation3], 128  }
  0x34   :  { %517 = vsyncadd [#allocation3], 4294967168 }
  0x35   :  { %518 = dma.done.wait [#allocation6], 2048  }
  0x36   :  { %519 = vsyncadd [#allocation6], 4294965248  ;;  %v527_v0 = vmov 0.0   ;;  %vm528_vm0 = vmmov 0   ;;  %v407_v1 = vld [vmem:[#allocation5] sm:$0xff]   ;;  %v408_v2 = vld [vmem:[#allocation5 + $0x8] sm:$0xff]  }
  0x37   :  { %357 = vmatprep.subr.bf16.mxu0 %v527_v0  ;;  %373 = vmatprep.mubr.msk.bf16.mxu0 %vm528_vm0, %v527_v0  ;;  %v409_v3 = vld [vmem:[#allocation5 + $0x10] sm:$0xff]   ;;  %v416_v4 = vld [vmem:[#allocation7] sm:$0xff]   ;;  %v410_v5 = vld [vmem:[#allocation5 + $0x18] sm:$0xff]  }
  0x38   :  { %377 = vmatprep.subr.bf16.mxu1 %v527_v0  ;;  %393 = vmatprep.mubr.msk.bf16.mxu1 %vm528_vm0, %v527_v0  ;;  %v417_v6 = vld [vmem:[#allocation7 + $0x8] sm:$0xff]   ;;  %v411_v7 = vld [vmem:[#allocation5 + $0x20] sm:$0xff]   ;;  %v418_v8 = vld [vmem:[#allocation7 + $0x10] sm:$0xff]  }
  0x39   :  { %358 = vmatpush3.bf16.msra.mxu0 %v407_v1  ;;  %378 = vmatpush3.bf16.msra.mxu1 %v416_v4  ;;  %v412_v9 = vld [vmem:[#allocation5 + $0x28] sm:$0xff]   ;;  %v419_v10 = vld [vmem:[#allocation7 + $0x18] sm:$0xff]   ;;  %v413_v11 = vld [vmem:[#allocation5 + $0x30] sm:$0xff]  }
  0x3a   :  { %359 = vmatprep.subr.bf16.mxu0 %v527_v0  ;;  %379 = vmatprep.subr.bf16.mxu1 %v527_v0  ;;  %v420_v12 = vld [vmem:[#allocation7 + $0x20] sm:$0xff]   ;;  %v414_v13 = vld [vmem:[#allocation5 + $0x38] sm:$0xff]   ;;  %v421_v14 = vld [vmem:[#allocation7 + $0x28] sm:$0xff]  }
  0x3b   :  { %v415_v15 = vld [vmem:[#allocation2] sm:$0xff]   ;;  %v422_v16 = vld [vmem:[#allocation7 + $0x30] sm:$0xff]  }
  0x3c   :  { %v423_v17 = vld [vmem:[#allocation7 + $0x38] sm:$0xff]  }
  0x3d   :  { %360 = vmatpush3.bf16.msra.mxu0 %v408_v2  ;;  %380 = vmatpush3.bf16.msra.mxu1 %v417_v6  ;;  %v320_v18 = vld [vmem:[%s634_s2] ss:$0 sm:$0xff]  ;;  %s529_s2 = smov [#allocation8]  }
  0x3e   :  { %361 = vmatprep.subr.bf16.mxu0 %v527_v0  ;;  %381 = vmatprep.subr.bf16.mxu1 %v527_v0  ;;  %v330_v28 = vld [vmem:[%s636_s4] ss:$0 sm:$0xff]  ;;  %s307_s7 = sshll.u32 %s529_s2, 4  ;;  %s308_s7 = int_to_ptr.vmem [resolvable:$true] %s307_s7 }
  0x3f   :  { %s494_s8 = scalar_lea.vmem %s308_s7, 256  ;;  %p499_p11 = scmp.lt.s32.totalorder %s308_s7, %s308_s7 }
  0x40   :  { %p495_p10 = scmp.ne.s32.totalorder %s308_s7, %s494_s8  ;;  %p500_p12 = scmp.lt.s32.totalorder %s494_s8, %s494_s8 }
  0x41   :  { %362 = vmatpush3.bf16.msra.mxu0 %v409_v3  ;;  %382 = vmatpush3.bf16.msra.mxu1 %v418_v8 }
  0x42   :  { %363 = vmatprep.subr.bf16.mxu0 %v527_v0  ;;  %383 = vmatprep.subr.bf16.mxu1 %v527_v0  ;;  %p501_p13 = por %p500_p12, %p499_p11 }
  0x44   :  { %p502_p0 = pnand %p501_p13, %p495_p10 }
  0x45   :  { %364 = vmatpush3.bf16.msra.mxu0 %v410_v5  ;;  %384 = vmatpush3.bf16.msra.mxu1 %v419_v10 }
  0x46   :  { %365 = vmatprep.subr.bf16.mxu0 %v527_v0  ;;  %385 = vmatprep.subr.bf16.mxu1 %v527_v0 }
  0x49   :  { %366 = vmatpush3.bf16.msra.mxu0 %v411_v7  ;;  %386 = vmatpush3.bf16.msra.mxu1 %v420_v12 }
  0x4a   :  { %367 = vmatprep.subr.bf16.mxu0 %v527_v0  ;;  %387 = vmatprep.subr.bf16.mxu1 %v527_v0 }
  0x4d   :  { %368 = vmatpush3.bf16.msra.mxu0 %v412_v9  ;;  %388 = vmatpush3.bf16.msra.mxu1 %v421_v14 }
  0x4e   :  { %369 = vmatprep.subr.bf16.mxu0 %v527_v0  ;;  %389 = vmatprep.subr.bf16.mxu1 %v527_v0 }
  0x51   :  { %370 = vmatpush3.bf16.msra.mxu0 %v413_v11  ;;  %390 = vmatpush3.bf16.msra.mxu1 %v422_v16 }
  0x52   :  { %371 = vmatprep.subr.bf16.mxu0 %v527_v0  ;;  %391 = vmatprep.subr.bf16.mxu1 %v527_v0 }
  0x55   :  { %372 = vmatpush3.bf16.msra.mxu0 %v414_v13  ;;  %392 = vmatpush3.bf16.msra.mxu1 %v423_v17 }
  0x58   :  { %374 = vmatmul.mubr.bf16.vlgmr.msra.gmra.mrb[0].mxu0 %v415_v15 }
 0x12b   :  { %v176_v19 = vpop.f32.mrb[0].mxu0 }
 0x12c   :  { %v177_v20 = vadd.f32 %v320_v18, %v176_v19  ;;  %v375_v21 = vpop.f32.mrb[1].mxu0 }
 0x12d   :  { %v179_v22 = vpop.f32.mrb[2].mxu0 }
 0x12e   :  { %v180_v23 = vadd.f32 %v320_v18, %v179_v22  ;;  %v376_v24 = vpop.f32.mrb[3].mxu0  ;;  %v183_v25 = vmax.f32 %v177_v20, 0.0 }
 0x130   :  { %v184_v26 = vmax.f32 %v180_v23, 0.0 }
 0x132   :  { %v202_v27 = vpack.c.bf16 %v184_v26, %v183_v25 }
 0x134   :  { %394 = vmatmul.mubr.bf16.vlgmr.msra.gmra.mrb[0].mxu1 %v202_v27 }
 0x207   :  { %v291_v29 = vpop.f32.mrb[0].mxu1 }
 0x208   :  { %v292_v30 = vadd.f32 %v330_v28, %v291_v29  ;;  %v395_v31 = vpop.f32.mrb[1].mxu1 }
 0x209   :  { %v294_v32 = vpop.f32.mrb[2].mxu1 }
 0x20a   :  { %424 = vtanh.f32 %v292_v30  ;;  %v295_v33 = vadd.f32 %v330_v28, %v294_v32  ;;  %v396_v34 = vpop.f32.mrb[3].mxu1 }
 0x20c   :  { %426 = vtanh.f32 %v295_v33 }
 0x214   :  { %v425_v35 = vpop.eup %424 }
 0x215   :  { %300 = vst [vmem:[#allocation8] sm:$0xff] %v425_v35 }
 0x216   :  { %v427_v36 = vpop.eup %426 }
 0x217   :  { %301 = vst [vmem:[#allocation8 + $0x8] sm:$0xff] %v427_v36 }
 0x218   :  { %505 = shalt.err (!%p502_p0)
}
 0x219   :  { %s506_s10 = scalar_lea.hbm %s637_s5, 256 }
 0x21a   :  { %p507_p1 = scmp.ne.s32.totalorder %s637_s5, %s506_s10  ;;  %p510_p2 = scmp.lt.u32.totalorder %s506_s10, %s637_s5 }
 0x21c   :  { %p512_p3 = pnand %p510_p2, %p507_p1 }
 0x21e   :  { %515 = shalt.err (!%p512_p3)
}
 0x21f   :  { %s530_s15 = smov 128   ;;  %s531_s16 = smov 8  }
 0x220   :  { %313 = dma.vmem_to_hbm [thread:$0]  %s308_s7, 256, %s637_s5, [#allocation4], %s530_s15, %s530_s15, %s531_s16  }
 0x221   :  { %520 = dma.done.wait [#allocation4], 256  }
 0x222   :  { %521 = vsyncadd [#allocation4], 4294967040 }
 0x223   :  { %317 = vsyncpa [#allocation3], 1 }
 0x224   :  { %318 = vsyncpa [#allocation6], 1 }
 0x225   :  { %319 = vsyncpa [#allocation4], 1 }

</bundles_post_ra>
